<compile_context>
chip_gen: v5e
topology: v5e:2x2
jax: 0.10.0
libtpu: 0.0.40
codegen_flags: <defaults>
</compile_context>

<pallas_src>
import math
from functools import partial

import jax
import jax.numpy as jnp
from jax import lax
from jax.experimental import pallas as pl
from jax.experimental.pallas import tpu as pltpu


_VMEM_BUDGET = 56 * 1024 * 1024       # stay under v7x's 64 MiB physical VMEM


def _round_up(x, m):
    return ((x + m - 1) // m) * m


def _sublane_base(dtype):
    # rows per sublane tile: 8 for f32, 16 for bf16, 32 for int8 / fp8
    return max(8, 32 // jnp.dtype(dtype).itemsize)


def _pick_tile(dim, target, base):
    """Largest tile <= target that divides dim and is a multiple of base
    (or the full dim, which is always a legal block extent)."""
    if dim <= target:
        return dim
    t = (target // base) * base
    while t >= base:
        if dim % t == 0:
            return t
        t -= base
    return dim            # no legal divisor below target: fall back to full dim


# ---------------------------------------------------------------------------
# Kernel 1: tiled matmul  y = x @ W  (+ optional bias), K-reduction in grid
# ---------------------------------------------------------------------------
def _matmul_kernel(x_ref, w_ref, o_ref, acc_ref):
    @pl.when(pl.program_id(2) == 0)
    def _():
        acc_ref[...] = jnp.zeros_like(acc_ref)

    acc_ref[...] += jnp.dot(x_ref[...], w_ref[...],
                            preferred_element_type=jnp.float32)

    @pl.when(pl.program_id(2) == pl.num_programs(2) - 1)
    def _():
        o_ref[...] = acc_ref[...].astype(o_ref.dtype)


def _matmul_bias_kernel(x_ref, w_ref, b_ref, o_ref, acc_ref):
    @pl.when(pl.program_id(2) == 0)
    def _():
        acc_ref[...] = jnp.zeros_like(acc_ref)

    acc_ref[...] += jnp.dot(x_ref[...], w_ref[...],
                            preferred_element_type=jnp.float32)

    @pl.when(pl.program_id(2) == pl.num_programs(2) - 1)
    def _():
        o_ref[...] = (acc_ref[...] + b_ref[...]).astype(o_ref.dtype)


def _mm_vmem_bytes(tm, tn, tk, dtype):
    db = jnp.dtype(dtype).itemsize
    blocks = 2 * (tm * tk + tk * tn + tm * tn + tn) * db   # double-buffered in/out(+bias)
    return blocks + tm * tn * 4                            # + f32 accumulator


def linear(x2d, w_t, b=None, *, tm=256, tn=512, tk=512):
    """x2d: (M, Cin), w_t: (Cin, Cout), b: (Cout,) or None -> (M, Cout)."""
    M, K = x2d.shape
    K2, Nout = w_t.shape
    assert K == K2
    tm = _pick_tile(M, tm, _sublane_base(x2d.dtype))        # dtype-aware sublane base
    tn = _pick_tile(Nout, tn, 128)
    tk = _pick_tile(K, tk, 128)

    est = _mm_vmem_bytes(tm, tn, tk, x2d.dtype)
    assert est <= _VMEM_BUDGET, (
        f"linear tiles ({tm},{tn},{tk}) need ~{est >> 20} MiB VMEM; no small "
        f"(8,128)-legal divisor found for shape ({M},{K})x({K},{Nout})")
    vmem_limit = min(_VMEM_BUDGET, max(2 * est, 16 * 1024 * 1024))

    grid = (M // tm, Nout // tn, K // tk)
    x_spec = pl.BlockSpec((tm, tk), lambda i, j, k: (i, k))
    w_spec = pl.BlockSpec((tk, tn), lambda i, j, k: (k, j))
    o_spec = pl.BlockSpec((tm, tn), lambda i, j, k: (i, j))
    scratch = [pltpu.VMEM((tm, tn), jnp.float32)]
    cparams = pltpu.CompilerParams(
        dimension_semantics=("parallel", "parallel", "arbitrary"),
        vmem_limit_bytes=vmem_limit)

    if b is None:
        return pl.pallas_call(
            _matmul_kernel,
            out_shape=jax.ShapeDtypeStruct((M, Nout), x2d.dtype),
            grid=grid,
            in_specs=[x_spec, w_spec],
            out_specs=o_spec,
            scratch_shapes=scratch,
            compiler_params=cparams,
        )(x2d, w_t)

    b2d = b.reshape(1, Nout)
    b_spec = pl.BlockSpec((1, tn), lambda i, j, k: (0, j))
    return pl.pallas_call(
        _matmul_bias_kernel,
        out_shape=jax.ShapeDtypeStruct((M, Nout), x2d.dtype),
        grid=grid,
        in_specs=[x_spec, w_spec, b_spec],
        out_specs=o_spec,
        scratch_shapes=scratch,
        compiler_params=cparams,
    )(x2d, w_t, b2d)


# ---------------------------------------------------------------------------
# Kernel 2: flash-style attention
#   grid = (B, head_groups, q_tiles, kv_tiles), kv axis last ("arbitrary")
#   q_ref/k_ref/v_ref/o_ref blocks: (1, tile, ghd) where ghd = heads_per_group*hd
#   online softmax: m/l/acc scratch persists across the kv axis.
# ---------------------------------------------------------------------------
def _flash_attn_kernel(q_ref, k_ref, v_ref, o_ref, m_sc, l_sc, acc_sc, *,
                       heads_per_group, head_dim):
    ki = pl.program_id(3)

    @pl.when(ki == 0)
    def _():
        m_sc[...] = jnp.full_like(m_sc, -jnp.inf)
        l_sc[...] = jnp.zeros_like(l_sc)
        acc_sc[...] = jnp.zeros_like(acc_sc)

    q = q_ref[0]            # (tq, ghd); softmax scale already folded into W_qs
    k = k_ref[0]            # (tkv, ghd)
    v = v_ref[0]            # (tkv, ghd)

    for h in range(heads_per_group):              # static loop inside aligned slab
        lo = h * head_dim
        hi = lo + head_dim
        qh = q[:, lo:hi]
        kh = k[:, lo:hi]
        vh = v[:, lo:hi]
        # QK^T as a direct contraction over head_dim (no transposed copy of K).
        s = lax.dot_general(qh, kh, (((1,), (1,)), ((), ())),
                            preferred_element_type=jnp.float32)       # (tq, tkv)
        m_prev = m_sc[h]                                              # (tq, 1)
        m_new = jnp.maximum(m_prev, jnp.max(s, axis=-1, keepdims=True))
        alpha = jnp.exp(m_prev - m_new)
        p = jnp.exp(s - m_new)
        l_sc[h] = alpha * l_sc[h] + jnp.sum(p, axis=-1, keepdims=True)
        acc_sc[h] = alpha * acc_sc[h] + jnp.dot(
            p.astype(vh.dtype), vh, preferred_element_type=jnp.float32)
        m_sc[h] = m_new

    @pl.when(ki == pl.num_programs(3) - 1)
    def _():
        # Exact divide for the final normalization (approx reciprocal would add
        # ~1e-2 relative error); per-head direct stores, no concatenate.
        for h in range(heads_per_group):
            lo = h * head_dim
            o_ref[0, :, lo:lo + head_dim] = (acc_sc[h] / l_sc[h]).astype(o_ref.dtype)


def _pick_head_group(num_heads, head_dim, dim):
    """Heads per kernel slab: slab width must be a multiple of 128 lanes (or the
    full channel dim) so q/k/v/o blocks are lane-aligned, legal BlockSpecs."""
    if dim % 128 != 0:
        return num_heads                       # slab == full C (always legal)
    for g in range(1, num_heads + 1):          # smallest group -> most grid parallelism
        if num_heads % g == 0 and (g * head_dim) % 128 == 0:
            return g
    return num_heads                           # slab == full C (multiple of 128)


def _attn_vmem_bytes(tq, tkv, ghd, head_dim, g_heads, dtype):
    db = jnp.dtype(dtype).itemsize
    tq8 = _round_up(tq, 8)
    blocks = 2 * (2 * tq * ghd + 2 * tkv * ghd) * db     # q,o + k,v double-buffered
    stats = 2 * g_heads * tq8 * 128 * 4                  # m, l (lane-padded)
    acc = g_heads * tq8 * _round_up(head_dim, 128) * 4   # f32 accumulator
    scores = 3 * tq8 * _round_up(tkv, 128) * 4           # s / p temporaries
    return blocks + stats + acc + scores


def attention(q_all, k_all, v_all, *, num_heads, q_tile=256, kv_tile=512):
    """q/k/v: (B, N, C) with head h packed in channels [h*hd, (h+1)*hd)."""
    B, N, C = q_all.shape
    assert C % num_heads == 0
    hd = C // num_heads
    base = _sublane_base(q_all.dtype)
    g_heads = _pick_head_group(num_heads, hd, C)
    ghd = g_heads * hd
    n_groups = num_heads // g_heads
    tq = _pick_tile(N, q_tile, base)
    tkv = _pick_tile(N, kv_tile, base)

    est = _attn_vmem_bytes(tq, tkv, ghd, hd, g_heads, q_all.dtype)
    assert est <= _VMEM_BUDGET, (
        f"attention tiles (tq={tq}, tkv={tkv}, ghd={ghd}) need ~{est >> 20} MiB VMEM")
    vmem_limit = min(_VMEM_BUDGET, max(2 * est, 16 * 1024 * 1024))

    grid = (B, n_groups, N // tq, N // tkv)
    q_spec = pl.BlockSpec((1, tq, ghd), lambda b, g, qi, ki: (b, qi, g))
    k_spec = pl.BlockSpec((1, tkv, ghd), lambda b, g, qi, ki: (b, ki, g))
    v_spec = pl.BlockSpec((1, tkv, ghd), lambda b, g, qi, ki: (b, ki, g))
    o_spec = pl.BlockSpec((1, tq, ghd), lambda b, g, qi, ki: (b, qi, g))

    return pl.pallas_call(
        partial(_flash_attn_kernel, heads_per_group=g_heads, head_dim=hd),
        out_shape=jax.ShapeDtypeStruct((B, N, C), q_all.dtype),
        grid=grid,
        in_specs=[q_spec, k_spec, v_spec],
        out_specs=o_spec,
        scratch_shapes=[
            pltpu.VMEM((g_heads, tq, 1), jnp.float32),    # running max  m
            pltpu.VMEM((g_heads, tq, 1), jnp.float32),    # running sum  l
            pltpu.VMEM((g_heads, tq, hd), jnp.float32),   # f32 output accumulator
        ],
        compiler_params=pltpu.CompilerParams(
            dimension_semantics=("parallel", "parallel", "parallel", "arbitrary"),
            vmem_limit_bytes=vmem_limit),
    )(q_all, k_all, v_all)


# ---------------------------------------------------------------------------
# Parameters
# ---------------------------------------------------------------------------
def init_params(key, dim):
    """PyTorch nn.Linear-style init; weights stored pre-transposed (Cin, Cout)."""
    k1, k2, k3, k4 = jax.random.split(key, 4)
    bound = 1.0 / math.sqrt(dim)
    w_qkv_t = jax.random.uniform(k1, (dim, 2 * dim), jnp.float32, -bound, bound)
    w_qs_t = jax.random.uniform(k2, (dim, dim), jnp.float32, -bound, bound)
    w_proj_t = jax.random.uniform(k3, (dim, dim), jnp.float32, -bound, bound)
    b_proj = jax.random.uniform(k4, (dim,), jnp.float32, -bound, bound)
    return {"w_qkv_t": w_qkv_t, "w_qs_t": w_qs_t,
            "w_proj_t": w_proj_t, "b_proj": b_proj}


def prepare_params(params, dim, num_heads, dtype=None):
    """One-time parameter transform:
      * split the packed qkv weight into K / V halves (torch layout: output
        channels [0,C) = K, [C,2C) = V, heads contiguous within each half),
      * fold the softmax scale (head_dim ** -0.5) into the q_shift weight,
      * optionally cast everything to a compute dtype (e.g. bf16)."""
    hd = dim // num_heads
    scale = hd ** -0.5
    prep = {
        "w_k_t": params["w_qkv_t"][:, :dim],
        "w_v_t": params["w_qkv_t"][:, dim:],
        "w_qs_t": params["w_qs_t"] * scale,
        "w_proj_t": params["w_proj_t"],
        "b_proj": params["b_proj"],
    }
    if dtype is not None:
        prep = {k: v.astype(dtype) for k, v in prep.items()}
    return prep


# ---------------------------------------------------------------------------
# CrossAttention forward (only free reshapes as glue; no XLA transposes)
# ---------------------------------------------------------------------------
def cross_attention_forward(prep, x, x_shift, num_heads, *, q_tile=256, kv_tile=512):
    """Eval-mode forward: attn_drop / proj_drop are identity."""
    B, N, C = x.shape
    x2d = x.reshape(B * N, C)
    k = linear(x2d, prep["w_k_t"]).reshape(B, N, C)
    v = linear(x2d, prep["w_v_t"]).reshape(B, N, C)
    q = linear(x_shift.reshape(B * N, C), prep["w_qs_t"]).reshape(B, N, C)

    o = attention(q, k, v, num_heads=num_heads, q_tile=q_tile, kv_tile=kv_tile)

    # TODO(synk): on v5e, fuse this proj matmul (+bias) into the attention
    # epilogue with w_proj resident in VMEM to save one HBM round trip of o.
    out = linear(o.reshape(B * N, C), prep["w_proj_t"], prep["b_proj"])
    return out.reshape(B, N, C)


# ---------------------------------------------------------------------------
# Pure-JAX reference (mirrors the PyTorch module exactly, uses raw params)
# ---------------------------------------------------------------------------
def reference_forward(params, x, x_shift, num_heads):
    B, N, C = x.shape
    hd = C // num_heads
    scale = hd ** -0.5
    kv = (x.reshape(B * N, C) @ params["w_qkv_t"]).reshape(B, N, 2, num_heads, hd)
    kv = kv.transpose(2, 0, 3, 1, 4)
    k, v = kv[0], kv[1]
    q_s = (x_shift.reshape(B * N, C) @ params["w_qs_t"]).reshape(B, N, num_heads, hd)
    q_s = q_s.transpose(0, 2, 1, 3)
    attn = jnp.einsum("bhqd,bhkd->bhqk", q_s, k) * scale
    attn = jax.nn.softmax(attn, axis=-1)
    o = jnp.einsum("bhqk,bhkd->bhqd", attn, v)
    o = o.transpose(0, 2, 1, 3).reshape(B * N, C)
    out = o @ params["w_proj_t"] + params["b_proj"]
    return out.reshape(B, N, C)


if __name__ == "__main__":
    # --- test 1: small, module-consistent shapes (full-array blocks) --------
    B, N, C, H = 2, 8, 32, 8                        # head_dim = 4
    kx, kxs, kp = jax.random.split(jax.random.PRNGKey(0), 3)
    x = jax.random.normal(kx, (B, N, C), jnp.float32)
    xs = jax.random.normal(kxs, (B, N, C), jnp.float32)
    params = init_params(kp, C)
    prep = prepare_params(params, C, H)
    out = jax.block_until_ready(cross_attention_forward(prep, x, xs, H))
    ref = reference_forward(params, x, xs, H)
    assert out.shape == (B, N, C)
    assert jnp.allclose(out, ref, atol=2e-2, rtol=2e-2), "mismatch vs reference (small)"

    # --- test 2: aligned shapes, small attention tiles -> exercises the
    #     flash Q/KV tiling and multi-step online softmax --------------------
    B2, N2, C2, H2 = 2, 128, 256, 8                 # head_dim = 32, ghd = 128
    kx2, kxs2, kp2 = jax.random.split(jax.random.PRNGKey(1), 3)
    x2 = jax.random.normal(kx2, (B2, N2, C2), jnp.float32)
    xs2 = jax.random.normal(kxs2, (B2, N2, C2), jnp.float32)
    params2 = init_params(kp2, C2)
    prep2 = prepare_params(params2, C2, H2)
    out2 = jax.block_until_ready(
        cross_attention_forward(prep2, x2, xs2, H2, q_tile=64, kv_tile=64))
    ref2 = reference_forward(params2, x2, xs2, H2)
    assert out2.shape == (B2, N2, C2)
    assert jnp.allclose(out2, ref2, atol=2e-2, rtol=2e-2), "mismatch (flash tiles)"

    # --- test 3: bf16 end-to-end (f32 accumulation inside both kernels) -----
    B3, N3, C3, H3 = 2, 512, 256, 8
    kx3, kxs3, kp3 = jax.random.split(jax.random.PRNGKey(2), 3)
    x3 = jax.random.normal(kx3, (B3, N3, C3), jnp.float32)
    xs3 = jax.random.normal(kxs3, (B3, N3, C3), jnp.float32)
    params3 = init_params(kp3, C3)
    prep3 = prepare_params(params3, C3, H3, dtype=jnp.bfloat16)
    out3 = jax.block_until_ready(
        cross_attention_forward(prep3, x3.astype(jnp.bfloat16),
                                xs3.astype(jnp.bfloat16), H3))
    ref3 = reference_forward(params3, x3, xs3, H3)
    assert out3.dtype == jnp.bfloat16
    assert jnp.allclose(out3.astype(jnp.float32), ref3,
                        atol=1.5e-1, rtol=1.5e-1), "mismatch vs reference (bf16)"

    print("KERNEL_OK")
</pallas_src>

<mosaic_0001>
module attributes {stable_mosaic.version = 11 : i64} {
  func.func @_matmul_kernel(%arg0: i32, %arg1: i32, %arg2: i32, %arg3: memref<16x32xf32, #tpu.memory_space<vmem>>, %arg4: memref<32x32xf32, #tpu.memory_space<vmem>>, %arg5: memref<16x32xf32, #tpu.memory_space<vmem>>, %arg6: memref<16x32xf32, #tpu.memory_space<vmem>>) attributes {dimension_semantics = [#tpu.dimension_semantics<parallel>, #tpu.dimension_semantics<parallel>, #tpu.dimension_semantics<arbitrary>], iteration_bounds = array<i64: 1, 1, 1>, scalar_prefetch = 0 : i64, scratch_operands = 1 : i64, tpu.core_type = #tpu.core_type<tc>, window_params = [{transform_indices = @transform_0, window_bounds = array<i64: 16, 32>}, {transform_indices = @transform_1, window_bounds = array<i64: 32, 32>}, {transform_indices = @transform_2, window_bounds = array<i64: 16, 32>}]} {
    %c0_i32 = arith.constant 0 : i32
    %0 = arith.cmpi eq, %arg2, %c0_i32 : i32
    %1 = arith.extui %0 : i1 to i32
    %c0_i32_0 = arith.constant 0 : i32
    %2 = arith.cmpi ne, %1, %c0_i32_0 : i32
    scf.if %2 {
      %cst_10 = arith.constant 0.000000e+00 : f32
      %12 = vector.broadcast %cst_10 : f32 to vector<16x32xf32>
      %c0_11 = arith.constant 0 : index
      %c0_12 = arith.constant 0 : index
      %13 = vector.load %arg6[%c0_11, %c0_12] : memref<16x32xf32, #tpu.memory_space<vmem>>, vector<16x32xf32>
      tpu.vector_store %arg6[%c0_11, %c0_12], %12 {strides = array<i32>} : memref<16x32xf32, #tpu.memory_space<vmem>>, vector<16x32xf32>,
    } else {
    }
    %c0 = arith.constant 0 : index
    %c0_1 = arith.constant 0 : index
    %3 = vector.load %arg6[%c0, %c0_1] : memref<16x32xf32, #tpu.memory_space<vmem>>, vector<16x32xf32>
    %c0_2 = arith.constant 0 : index
    %c0_3 = arith.constant 0 : index
    %4 = vector.load %arg3[%c0_2, %c0_3] : memref<16x32xf32, #tpu.memory_space<vmem>>, vector<16x32xf32>
    %c0_4 = arith.constant 0 : index
    %c0_5 = arith.constant 0 : index
    %5 = vector.load %arg4[%c0_4, %c0_5] : memref<32x32xf32, #tpu.memory_space<vmem>>, vector<32x32xf32>
    %cst = arith.constant dense<0.000000e+00> : vector<16x32xf32>
    %6 = tpu.matmul %4, %5, %cst {dimension_numbers = #tpu.dot_dimension_numbers<[1], [0], [0], [1], [0, 0, 1, 1], [], []>} : vector<16x32xf32>, vector<32x32xf32>, vector<16x32xf32> -> vector<16x32xf32>
    %7 = arith.addf %3, %6 : vector<16x32xf32>
    %c0_6 = arith.constant 0 : index
    %c0_7 = arith.constant 0 : index
    %8 = vector.load %arg6[%c0_6, %c0_7] : memref<16x32xf32, #tpu.memory_space<vmem>>, vector<16x32xf32>
    tpu.vector_store %arg6[%c0_6, %c0_7], %7 {strides = array<i32>} : memref<16x32xf32, #tpu.memory_space<vmem>>, vector<16x32xf32>,
    %c0_i32_8 = arith.constant 0 : i32
    %9 = arith.cmpi eq, %arg2, %c0_i32_8 : i32
    %10 = arith.extui %9 : i1 to i32
    %c0_i32_9 = arith.constant 0 : i32
    %11 = arith.cmpi ne, %10, %c0_i32_9 : i32
    scf.if %11 {
      %c0_10 = arith.constant 0 : index
      %c0_11 = arith.constant 0 : index
      %12 = vector.load %arg6[%c0_10, %c0_11] : memref<16x32xf32, #tpu.memory_space<vmem>>, vector<16x32xf32>
      %c0_12 = arith.constant 0 : index
      %c0_13 = arith.constant 0 : index
      %13 = vector.load %arg5[%c0_12, %c0_13] : memref<16x32xf32, #tpu.memory_space<vmem>>, vector<16x32xf32>
      tpu.vector_store %arg5[%c0_12, %c0_13], %12 {strides = array<i32>} : memref<16x32xf32, #tpu.memory_space<vmem>>, vector<16x32xf32>,
    } else {
    }
    return
  }
  func.func @transform_0(%arg0: i32, %arg1: i32, %arg2: i32) -> (i32, i32) {
    %c0_i32 = arith.constant 0 : i32
    return %arg0, %arg2 : i32, i32
  }
  func.func @transform_1(%arg0: i32, %arg1: i32, %arg2: i32) -> (i32, i32) {
    %c0_i32 = arith.constant 0 : i32
    return %arg2, %arg1 : i32, i32
  }
  func.func @transform_2(%arg0: i32, %arg1: i32, %arg2: i32) -> (i32, i32) {
    %c0_i32 = arith.constant 0 : i32
    return %arg0, %arg1 : i32, i32
  }
}

</mosaic_0001>

<bundles_post_ra>
// kernel: tpu_custom_call.1
= control target key start
LH: loop header
LB: loop body
LE: loop exit
PB: predicated region body
PF: predicated region fallthrough
CT: control target
= control target key end

     0   :  { %7 = vsyncpa [#allocation4], 0  ;;  %s257_s0 = inlined_call_operand.hbm [shape: f32[16,32], index: 0, kind: input, shape index: {}]   ;;  %s258_s1 = inlined_call_operand.hbm [shape: f32[32,32], index: 1, kind: input, shape index: {}]   ;;  %s259_s2 = inlined_call_operand.hbm [shape: f32[16,32], index: 2, kind: output, shape index: {}]  }
   0x1   :  { %8 = vsyncpa [#allocation7], 0 }
   0x2   :  { %9 = vsyncpa [#allocation5], 0  ;;  %s14_s11 = sshll.u32 %s257_s0, 4  ;;  %s210_s12 = smov [#allocation3]   ;;  %s15_s11 = int_to_ptr.hbm [resolvable:$true] %s14_s11 }
   0x3   :  { %s16_s13 = sshll.u32 %s210_s12, 4  ;;  %s27_s16 = sshll.u32 %s258_s1, 4  ;;  %s17_s13 = int_to_ptr.vmem [resolvable:$true] %s16_s13  ;;  %s28_s16 = int_to_ptr.hbm [resolvable:$true] %s27_s16 }
   0x4   :  { %s211_s17 = smov 128   ;;  %s212_s18 = smov 8  }
   0x5   :  { %22 = dma.hbm_to_vmem [thread:$0]  %s15_s11, 256, %s17_s13, [#allocation4], %s211_s17, %s211_s17, %s212_s18  }
   0x6   :  { %s213_s19 = smov [#allocation6]  }
   0x7   :  { %s29_s20 = sshll.u32 %s213_s19, 4  ;;  %s30_s20 = int_to_ptr.vmem [resolvable:$true] %s29_s20 }
   0x8   :  { %35 = dma.hbm_to_vmem [thread:$0]  %s28_s16, 512, %s30_s20, [#allocation7], %s211_s17, %s211_s17, %s212_s18  }
   0x9   :  { %204 = dma.done.wait [#allocation4], 256  }
   0xa   :  { %205 = vsyncadd [#allocation4], 4294967040 }
   0xb   :  { %206 = dma.done.wait [#allocation7], 512  }
   0xc   :  { %207 = vsyncadd [#allocation7], 4294966784  ;;  %vm48_vm0 = vcmask 261120   ;;  %v214_v0 = vmov 0.0   ;;  %v58_v1 = vld [vmem:[#allocation6 + $0x18] sm:$0xff]  ;;  %v57_v2 = vld [vmem:[#allocation6 + $0x10] sm:$0xff] }
   0xd   :  { %49 = vst.msk [vmem:[#allocation2] sm:$0xff] %vm48_vm0, %v214_v0  ;;  %78 = vmatpush.msra.mxu0 %v58_v1  ;;  %122 = vmatpush.msra.mxu1 %v58_v1  ;;  %v56_v3 = vld [vmem:[#allocation6 + $0x8] sm:$0xff]  ;;  %v55_v4 = vld [vmem:[#allocation6] sm:$0xff]  ;;  %v53_v5 = vld [vmem:[#allocation3] sm:$0xff]  ;;  %s215_s0 = smov [#allocation8]   ;;  %s106_s23 = sshll.u32 %s259_s2, 4  ;;  %s107_s23 = int_to_ptr.hbm [resolvable:$true] %s106_s23 }
   0xe   :  { %50 = vst.msk [vmem:[#allocation2 + $0x8] sm:$0xff] %vm48_vm0, %v214_v0  ;;  %v54_v6 = vld [vmem:[#allocation3 + $0x8] sm:$0xff]  ;;  %s104_s1 = sshll.u32 %s215_s0, 4  ;;  %s105_s1 = int_to_ptr.vmem [resolvable:$true] %s104_s1 }
   0xf   :  { %79 = vmatpush.msra.mxu0 %v57_v2  ;;  %123 = vmatpush.msra.mxu1 %v57_v2 }
  0x11   :  { %80 = vmatpush.msra.mxu0 %v56_v3  ;;  %124 = vmatpush.msra.mxu1 %v56_v3 }
  0x13   :  { %81 = vmatpush.msra.mxu0 %v55_v4  ;;  %125 = vmatpush.msra.mxu1 %v55_v4 }
  0x14   :  { %120 = vmatmul.msk.f32.vlgmr.msra.gmra.mxu0 %vm48_vm0, %v53_v5  ;;  %121 = vmatmul.msk.f32.vlgmr.msra.gmra.mxu1 %vm48_vm0, %v54_v6  ;;  %v51_v7 = vld [vmem:[#allocation2] sm:$0xff] }
  0x15   :  { %v52_v8 = vld [vmem:[#allocation2 + $0x8] sm:$0xff] }
  0x91   :  { %v83_v9 = vpop.f32.mrf.mxu0  ;;  %v86_v10 = vpop.f32.mrf.mxu1 }
  0x92   :  { %v89_v11 = vadd.f32 %v83_v9, %v51_v7  ;;  %v90_v12 = vadd.f32 %v86_v10, %v52_v8 }
  0x94   :  { %91 = vst.msk [vmem:[#allocation2] sm:$0xff] %vm48_vm0, %v89_v11 }
  0x95   :  { %92 = vst.msk [vmem:[#allocation2 + $0x8] sm:$0xff] %vm48_vm0, %v90_v12 }
  0x9b   :  { %v96_v13 = vld [vmem:[#allocation2] sm:$0xff] }
  0x9c   :  { %v97_v14 = vld [vmem:[#allocation2 + $0x8] sm:$0xff]  ;;  %98 = vst.msk [vmem:[#allocation8] sm:$0xff] %vm48_vm0, %v96_v13 }
  0x9d   :  { %99 = vst.msk [vmem:[#allocation8 + $0x8] sm:$0xff] %vm48_vm0, %v97_v14 }
  0x9e   :  { %112 = dma.vmem_to_hbm [thread:$0]  %s105_s1, 256, %s107_s23, [#allocation5], %s211_s17, %s211_s17, %s212_s18  }
  0x9f   :  { %208 = dma.done.wait [#allocation5], 256  }
  0xa0   :  { %209 = vsyncadd [#allocation5], 4294967040 }
  0xa1   :  { %117 = vsyncpa [#allocation4], 1 }
  0xa2   :  { %118 = vsyncpa [#allocation7], 1 }
  0xa3   :  { %119 = vsyncpa [#allocation5], 1 }

</bundles_post_ra>
